<compile_context>
chip_gen: v7x
topology: tpu7x:2x2x1
jax: 0.10.0
libtpu: 0.0.40
codegen_flags: <defaults>
</compile_context>

<pallas_src>
import math
import jax
import jax.numpy as jnp
from jax.experimental import pallas as pl
from jax.experimental.pallas import tpu as pltpu


def _softplus(x):
    # matches torch.nn.functional.softplus (beta=1, threshold=20)
    return jnp.where(x > 20.0, x, jnp.log1p(jnp.exp(jnp.minimum(x, 20.0))))


def _cdiv(a, b):
    return -(-a // b)


def _round_up(x, m):
    return ((x + m - 1) // m) * m


def _lane_pad(n):
    # 128-lane alignment; round to 256 once the real dim is >=256 so a single
    # tile fills the 2x256x256 MXUs on v6e/v7x (no effect on v5e's 4x128x128).
    return _round_up(n, 256 if n >= 256 else 128)


# ---------------------------------------------------------------------------
# Kernel:  o = softplus(x @ W1' + b1t) @ W2' + b2t
#   x   : (TM, Cin_p)   = [features | one-hot(node) | 0]     (matmul dtype)
#   W1' : (Cin_p, Hp)   = [W1*s ; s*node_bias ; 0]           (matmul dtype)
#   b1t : (1, Hp)       = s*(b1 + an_bias + t*hb1)           (f32, resident)
#   W2' : (Hp, Cout_p)  = [W2 ; 0]                           (matmul dtype)
#   b2t : (1, Cout_p)   = b2 + t*hb2                         (f32, resident)
# ---------------------------------------------------------------------------
def diff_layers_kernel(x_ref, w1_ref, b1_ref, w2_ref, b2_ref, o_ref):
    h = jnp.dot(x_ref[...], w1_ref[...], preferred_element_type=jnp.float32)
    h = _softplus(h + b1_ref[...])          # f32 bias add + EUP softplus
    # NOTE: padded hidden columns evaluate softplus(0) = log(2) != 0; they are
    # cancelled only because W2's padded rows are exactly zero (jnp.pad).
    # Do not change the W2 row padding to anything non-zero.
    y = jnp.dot(h.astype(w2_ref.dtype), w2_ref[...],
                preferred_element_type=jnp.float32)
    o_ref[...] = (y + b2_ref[...]).astype(o_ref.dtype)


# ---------------------------------------------------------------------------
# t-independent folding / padding / casts.  Call ONCE and reuse across all
# ODE-solver evaluations; only the tiny t-dependent biases change per call.
# ---------------------------------------------------------------------------
def prepare_weights(params, *, matmul_dtype=jnp.bfloat16):
    C, H = params["w1"].shape
    D = params["node_bias"].shape[0]
    Cin_p = _lane_pad(C + D)        # K of GEMM-1: features + one-hot(node)
    Hp = _lane_pad(H)
    Cout_p = _lane_pad(C)

    # ActNorm:  (z + an_bias) * softplus(an_weight)
    # with z = x @ W1 + b1 + t*hb1 + node_bias
    #   => x @ (W1*s) + onehot(node) @ (s*node_bias) + s*(b1 + an_bias + t*hb1)
    s = _softplus(params["an_weight"])                        # (1, H)
    w1_rows = jnp.concatenate([params["w1"] * s,              # (C, H)
                               params["node_bias"] * s],      # (D, H)
                              axis=0)
    w1p = jnp.pad(w1_rows, ((0, Cin_p - (C + D)), (0, Hp - H))).astype(matmul_dtype)
    w2p = jnp.pad(params["w2"], ((0, Hp - H), (0, Cout_p - C))).astype(matmul_dtype)

    # t-dependent pieces stay in f32 (tiny resident blocks in the kernel).
    sb1 = jnp.pad(s * (params["b1"] + params["an_bias"]), ((0, 0), (0, Hp - H)))
    shb1 = jnp.pad(s * params["hb1"], ((0, 0), (0, Hp - H)))
    b2 = jnp.pad(params["b2"], ((0, 0), (0, Cout_p - C)))
    hb2 = jnp.pad(params["hb2"], ((0, 0), (0, Cout_p - C)))

    return dict(w1p=w1p, w2p=w2p, sb1=sb1, shb1=shb1, b2=b2, hb2=hb2,
                C=C, D=D, H=H, Cin_p=Cin_p, Hp=Hp, Cout_p=Cout_p,
                matmul_dtype=matmul_dtype)


def _row_tiling(M, prep, out_itemsize, *, row_tile, vmem_budget=40 * 2**20):
    """Pick (TM, grid) : >=2 tiles when possible (v7x megacore), VMEM-capped."""
    Cin_p, Hp, Cout_p = prep["Cin_p"], prep["Hp"], prep["Cout_p"]
    mm_isz = jnp.dtype(prep["matmul_dtype"]).itemsize
    # Resident constant-index blocks (counted double-buffered, conservative).
    resident = 2 * (Cin_p * Hp + Hp * Cout_p) * mm_isz + 2 * (Hp + Cout_p) * 4
    G = max(1, _cdiv(M, row_tile))
    if M >= 16:
        G = max(G, 2)               # v7x: give both TensorCores at least one tile
    TM = _round_up(_cdiv(M, G), 8)
    # Double-buffered streamed x / out tiles must fit the VMEM budget.
    per_row = 2 * (Cin_p * mm_isz + Cout_p * out_itemsize)
    tm_cap = max(8, ((vmem_budget - resident) // per_row) // 8 * 8)
    TM = max(8, min(TM, tm_cap))
    G = _cdiv(M, TM)
    return TM, G


def diff_layers_forward(t, hstate, prep, *, row_tile=512):
    """Per-call work: tiny t-dependent biases, one-hot pad of x, one kernel.

    row_tile: 512 is VMEM-safe on v7x (64 MiB physical); v5e/v6e (128 MiB VMEM)
    can pass 1024 for large M to amortize per-step pipeline overhead.
    """
    N, D, C = hstate.shape
    assert C == prep["C"] and D == prep["D"], "prepared weights shape mismatch"
    M = N * D
    Cin_p, Hp, Cout_p = prep["Cin_p"], prep["Hp"], prep["Cout_p"]
    mm_dtype = prep["matmul_dtype"]
    out_dtype = hstate.dtype

    TM, G = _row_tiling(M, prep, jnp.dtype(out_dtype).itemsize, row_tile=row_tile)
    Mp = G * TM

    t = jnp.asarray(t, jnp.float32)
    b1t = prep["sb1"] + t * prep["shb1"]          # (1, Hp)      f32
    b2t = prep["b2"] + t * prep["hb2"]            # (1, Cout_p)  f32

    # x rows = [features | one-hot(node id)], node id = row % D.  The one-hot
    # columns let GEMM-1 apply s*node_bias per row for free inside the MXU
    # (those K columns would otherwise be zero padding).
    onehot = jax.nn.one_hot(jnp.arange(M) % D, D, dtype=jnp.float32)
    x = jnp.concatenate([hstate.reshape(M, C).astype(jnp.float32), onehot], axis=1)
    x = jnp.pad(x, ((0, Mp - M), (0, Cin_p - (C + D)))).astype(mm_dtype)

    out = pl.pallas_call(
        diff_layers_kernel,
        out_shape=jax.ShapeDtypeStruct((Mp, Cout_p), out_dtype),
        grid=(G,),
        in_specs=[
            pl.BlockSpec((TM, Cin_p), lambda i: (i, 0)),     # x rows (streamed)
            pl.BlockSpec((Cin_p, Hp), lambda i: (0, 0)),     # W1'  (resident)
            pl.BlockSpec((1, Hp), lambda i: (0, 0)),         # b1t  (tiny resident)
            pl.BlockSpec((Hp, Cout_p), lambda i: (0, 0)),    # W2'  (resident)
            pl.BlockSpec((1, Cout_p), lambda i: (0, 0)),     # b2t  (tiny resident)
        ],
        out_specs=pl.BlockSpec((TM, Cout_p), lambda i: (i, 0)),
        compiler_params=pltpu.CompilerParams(
            dimension_semantics=("parallel",),
            vmem_limit_bytes=48 * 1024 * 1024),
    )(x, prep["w1p"], b1t, prep["w2p"], b2t)

    # TODO(synk): an ODE solver should keep the state in the padded (Mp, Cout_p)
    # layout across evaluations (pad once, slice once at the end); this per-call
    # slice re-reads the padded buffer (~Cout_p/C read amplification for small C).
    return out[:M, :C].reshape(N, D, C)


# ---------------------------------------------------------------------------
# Pure-JAX reference: the *unfused* layer chain (checks the wrapper folding).
# ---------------------------------------------------------------------------
def diff_layers_ref(t, hstate, params):
    h = jnp.einsum("ndc,ch->ndh", hstate, params["w1"])
    h = h + params["b1"] + t * params["hb1"]                        # ConcatLinear_v2
    h = h + params["node_bias"]                                     # NodesBias
    h = (h + params["an_bias"]) * _softplus(params["an_weight"])    # ActNorm
    h = _softplus(h)                                                # activation
    y = jnp.einsum("ndh,hc->ndc", h, params["w2"])
    y = y + params["b2"] + t * params["hb2"]                        # final ConcatLinear_v2
    return y


def init_params(key, c_in, hidden, num_nodes, max_nodes, zero_init_last=True):
    ks = jax.random.split(key, 8)

    def linear_init(k, fan_in, fan_out):
        bound = 1.0 / math.sqrt(fan_in)
        kw, kb = jax.random.split(k)
        w = jax.random.uniform(kw, (fan_in, fan_out), jnp.float32, -bound, bound)
        b = jax.random.uniform(kb, (1, fan_out), jnp.float32, -bound, bound)
        return w, b

    w1, b1 = linear_init(ks[0], c_in, hidden)
    hb1 = jax.random.uniform(ks[1], (1, hidden), jnp.float32, -1.0, 1.0)
    node_bias = 0.01 * jax.random.normal(ks[2], (max_nodes, hidden), jnp.float32)
    node_bias = node_bias[:num_nodes]
    # Deterministic stand-ins for ActNorm's data-dependent init (see TODO).
    an_bias = 0.1 * jax.random.normal(ks[5], (1, hidden), jnp.float32)
    an_weight = 0.1 * jax.random.normal(ks[6], (1, hidden), jnp.float32)

    if zero_init_last:
        w2 = jnp.zeros((hidden, c_in), jnp.float32)
        b2 = jnp.zeros((1, c_in), jnp.float32)
        hb2 = jnp.zeros((1, c_in), jnp.float32)
    else:
        w2, b2 = linear_init(ks[3], hidden, c_in)
        hb2 = jax.random.uniform(ks[4], (1, c_in), jnp.float32, -1.0, 1.0)

    return dict(w1=w1, b1=b1, hb1=hb1, node_bias=node_bias,
                an_bias=an_bias, an_weight=an_weight,
                w2=w2, b2=b2, hb2=hb2)


if __name__ == "__main__":
    # (N, D, C) = (batch, num_nodes, features)
    N, D, c_in, hidden, max_nodes = 2, 8, 4, 32, 25
    key = jax.random.PRNGKey(0)
    kx, kp = jax.random.split(key)

    hstate = jax.random.normal(kx, (N, D, c_in), jnp.float32)
    t = jnp.float32(0.3)

    # Non-zero final layer so the folding is exercised end to end.
    p_check = init_params(kp, c_in, hidden, D, max_nodes, zero_init_last=False)
    out_r = diff_layers_ref(t, hstate, p_check)

    # (1) f32-operand path: tight check of the folding algebra + kernel plumbing.
    prep32 = prepare_weights(p_check, matmul_dtype=jnp.float32)
    out_f32 = jax.block_until_ready(diff_layers_forward(t, hstate, prep32))
    assert out_f32.shape == (N, D, c_in)
    assert jnp.allclose(out_f32, out_r, atol=2e-5, rtol=1e-5), "f32 kernel mismatch"

    # (2) production bf16-operand path (f32 accumulation / bias adds / softplus):
    #     tolerance reflects bf16 operand rounding only.
    prep16 = prepare_weights(p_check, matmul_dtype=jnp.bfloat16)
    out_bf16 = jax.block_until_ready(diff_layers_forward(t, hstate, prep16))
    assert out_bf16.shape == (N, D, c_in)
    assert jnp.allclose(out_bf16, out_r, atol=5e-2, rtol=5e-2), "bf16 kernel mismatch"

    # (3) faithful DiffLayers params: zero_init=True zeroes the final
    #     ConcatLinear_v2, so dstate is exactly zero (exact even in bf16).
    p = init_params(kp, c_in, hidden, D, max_nodes, zero_init_last=True)
    dstate = jax.block_until_ready(
        diff_layers_forward(t, hstate, prepare_weights(p)))
    assert dstate.shape == (N, D, c_in)
    assert jnp.allclose(dstate, jnp.zeros_like(dstate)), "zero_init final layer"

    print("KERNEL_OK")
</pallas_src>

<mosaic_0001>
module attributes {stable_mosaic.version = 11 : i64} {
  func.func @diff_layers_kernel(%arg0: i32, %arg1: memref<8x128xf32, #tpu.memory_space<vmem>>, %arg2: memref<128x128xf32, #tpu.memory_space<vmem>>, %arg3: memref<1x128xf32, #tpu.memory_space<vmem>>, %arg4: memref<128x128xf32, #tpu.memory_space<vmem>>, %arg5: memref<1x128xf32, #tpu.memory_space<vmem>>, %arg6: memref<8x128xf32, #tpu.memory_space<vmem>>) attributes {dimension_semantics = [#tpu.dimension_semantics<parallel>], iteration_bounds = array<i64: 2>, scalar_prefetch = 0 : i64, scratch_operands = 0 : i64, tpu.core_type = #tpu.core_type<tc>, window_params = [{transform_indices = @transform_0, window_bounds = array<i64: 8, 128>}, {pipeline_mode = #tpu.pipeline_mode<synchronous>, transform_indices = @transform_1, window_bounds = array<i64: 128, 128>}, {pipeline_mode = #tpu.pipeline_mode<synchronous>, transform_indices = @transform_2, window_bounds = array<i64: 1, 128>}, {pipeline_mode = #tpu.pipeline_mode<synchronous>, transform_indices = @transform_3, window_bounds = array<i64: 128, 128>}, {pipeline_mode = #tpu.pipeline_mode<synchronous>, transform_indices = @transform_4, window_bounds = array<i64: 1, 128>}, {transform_indices = @transform_5, window_bounds = array<i64: 8, 128>}]} {
    %c0 = arith.constant 0 : index
    %c0_0 = arith.constant 0 : index
    %0 = vector.load %arg1[%c0, %c0_0] : memref<8x128xf32, #tpu.memory_space<vmem>>, vector<8x128xf32>
    %c0_1 = arith.constant 0 : index
    %c0_2 = arith.constant 0 : index
    %1 = vector.load %arg2[%c0_1, %c0_2] : memref<128x128xf32, #tpu.memory_space<vmem>>, vector<128x128xf32>
    %cst = arith.constant dense<0.000000e+00> : vector<8x128xf32>
    %2 = tpu.matmul %0, %1, %cst {dimension_numbers = #tpu.dot_dimension_numbers<[1], [0], [0], [1], [0, 0, 1, 1], [], []>} : vector<8x128xf32>, vector<128x128xf32>, vector<8x128xf32> -> vector<8x128xf32>
    %c0_3 = arith.constant 0 : index
    %c0_4 = arith.constant 0 : index
    %3 = vector.load %arg3[%c0_3, %c0_4] : memref<1x128xf32, #tpu.memory_space<vmem>>, vector<1x128xf32>
    %4 = vector.broadcast %3 : vector<1x128xf32> to vector<8x128xf32>
    %5 = arith.addf %2, %4 : vector<8x128xf32>
    %cst_5 = arith.constant 2.000000e+01 : f32
    %6 = vector.broadcast %cst_5 : f32 to vector<8x128xf32>
    %7 = arith.cmpf ogt, %5, %6 : vector<8x128xf32>
    %cst_6 = arith.constant 2.000000e+01 : f32
    %8 = vector.broadcast %cst_6 : f32 to vector<8x128xf32>
    %9 = arith.minimumf %5, %8 : vector<8x128xf32>
    %10 = math.exp %9 : vector<8x128xf32>
    %11 = math.log1p %10 : vector<8x128xf32>
    %12 = arith.select %7, %5, %11 : vector<8x128xi1>, vector<8x128xf32>
    %c0_7 = arith.constant 0 : index
    %c0_8 = arith.constant 0 : index
    %13 = vector.load %arg4[%c0_7, %c0_8] : memref<128x128xf32, #tpu.memory_space<vmem>>, vector<128x128xf32>
    %cst_9 = arith.constant dense<0.000000e+00> : vector<8x128xf32>
    %14 = tpu.matmul %12, %13, %cst_9 {dimension_numbers = #tpu.dot_dimension_numbers<[1], [0], [0], [1], [0, 0, 1, 1], [], []>} : vector<8x128xf32>, vector<128x128xf32>, vector<8x128xf32> -> vector<8x128xf32>
    %c0_10 = arith.constant 0 : index
    %c0_11 = arith.constant 0 : index
    %15 = vector.load %arg5[%c0_10, %c0_11] : memref<1x128xf32, #tpu.memory_space<vmem>>, vector<1x128xf32>
    %16 = vector.broadcast %15 : vector<1x128xf32> to vector<8x128xf32>
    %17 = arith.addf %14, %16 : vector<8x128xf32>
    %c0_12 = arith.constant 0 : index
    %c0_13 = arith.constant 0 : index
    %18 = vector.load %arg6[%c0_12, %c0_13] : memref<8x128xf32, #tpu.memory_space<vmem>>, vector<8x128xf32>
    tpu.vector_store %arg6[%c0_12, %c0_13], %17 {strides = array<i32>} : memref<8x128xf32, #tpu.memory_space<vmem>>, vector<8x128xf32>,
    return
  }
  func.func @transform_0(%arg0: i32) -> (i32, i32) {
    %c0_i32 = arith.constant 0 : i32
    %c0_i32_0 = arith.constant 0 : i32
    return %arg0, %c0_i32 : i32, i32
  }
  func.func @transform_1(%arg0: i32) -> (i32, i32) {
    %c0_i32 = arith.constant 0 : i32
    %c0_i32_0 = arith.constant 0 : i32
    %c0_i32_1 = arith.constant 0 : i32
    return %c0_i32, %c0_i32_0 : i32, i32
  }
  func.func @transform_2(%arg0: i32) -> (i32, i32) {
    %c0_i32 = arith.constant 0 : i32
    %c0_i32_0 = arith.constant 0 : i32
    %c0_i32_1 = arith.constant 0 : i32
    return %c0_i32, %c0_i32_0 : i32, i32
  }
  func.func @transform_3(%arg0: i32) -> (i32, i32) {
    %c0_i32 = arith.constant 0 : i32
    %c0_i32_0 = arith.constant 0 : i32
    %c0_i32_1 = arith.constant 0 : i32
    return %c0_i32, %c0_i32_0 : i32, i32
  }
  func.func @transform_4(%arg0: i32) -> (i32, i32) {
    %c0_i32 = arith.constant 0 : i32
    %c0_i32_0 = arith.constant 0 : i32
    %c0_i32_1 = arith.constant 0 : i32
    return %c0_i32, %c0_i32_0 : i32, i32
  }
  func.func @transform_5(%arg0: i32) -> (i32, i32) {
    %c0_i32 = arith.constant 0 : i32
    %c0_i32_0 = arith.constant 0 : i32
    return %arg0, %c0_i32 : i32, i32
  }
}

</mosaic_0001>

<bundles_post_ra>
// kernel: tpu_custom_call.1
= control target key start
LH: loop header
LB: loop body
LE: loop exit
PB: predicated region body
PF: predicated region fallthrough
CT: control target
= control target key end

     0   :  { %10 = vsyncpa [#allocation3], 0  ;;  %s1275_s0 = inlined_call_operand.hbm [shape: f32[16,128], index: 0, kind: input, shape index: {}]   ;;  %s1276_s1 = inlined_call_operand.hbm [shape: f32[128,128], index: 1, kind: input, shape index: {}]   ;;  %s1277_s2 = inlined_call_operand.vmem [shape: f32[1,128], index: 2, kind: input, shape index: {}]   ;;  %s1278_s3 = inlined_call_operand.hbm [shape: f32[128,128], index: 3, kind: input, shape index: {}]   ;;  %s1279_s4 = inlined_call_operand.vmem [shape: f32[1,128], index: 4, kind: input, shape index: {}]   ;;  %s1280_s5 = inlined_call_operand.hbm [shape: f32[16,128], index: 5, kind: output, shape index: {}]  }
   0x1   :  { %12 = vsyncpa [#allocation3 + $0x1], 0 }
   0x2   :  { %13 = vsyncpa [#allocation6], 0 }
   0x3   :  { %14 = vsyncpa [#allocation4], 0 }
   0x4   :  { %16 = vsyncpa [#allocation4 + $0x1], 0  ;;  %s1017_s18 = smov 0   ;;  %s1019_s19 = smov 0  }
   0x5   :  { %s1021_s20 = smov 0   ;;  %s1023_s21 = smov 0  }
   0x6 LB: > { %s1038_s22 = sadd.s32 4294967295, %s976_s21   ;;  %s574_s23 = sadd.s32 4294967294, %s976_s21   ;;  %s976_s21 = sphi %s1023_s21, %s1300_s21   ;;  %s972_s20 = sphi %s1021_s20, %s1299_s20   ;;  %s968_s19 = sphi %s1019_s19, %s1298_s19   ;;  %s964_s18 = sphi %s1017_s18, %s1297_s18  }
   0x7   : > { %p42_p0 = scmp.ne.s32.totalorder %s968_s19, %s964_s18  ;;  %p1281_p1 = scmp.eq.s32.totalorder %s1038_s22, 0 }
   0x8   : > { %p156_p3 = scmp.eq.s32.totalorder %s574_s23, 1  ;;  %p575_p5 = scmp.ge.s32.totalorder %s976_s21, 1 }
   0x9   : > { %p1047_p4 = por %p1281_p1, %p42_p0  ;;  %p163_p7 = scmp.lt.s32.totalorder %s976_s21, 3 }
   0xa   : > { %p1052_p6 = por %p156_p3, %p42_p0  ;;  %s978_s27 = smov [#allocation5]  }
   0xb   : > { %s1284_s24 = scalar_select %p1047_p4, 1, 0 }
   0xc   : > { %s1285_s25 = scalar_select %p1052_p6, 1, 0 }
   0xd   : > { %p1057_p8 = pnand %p575_p5, %p163_p7  ;;  %s175_s28 = sshll.u32 %s978_s27, 4  ;;  %s1061_s28 = int_to_ptr.vmem [resolvable:$true] %s175_s28 }
   0xe   : > { %s979_s30 = smov [#allocation7]   ;;  %s820_s9 = scalar_lea.hbm %s1276_s1, 2048 }
   0xf   : > { %p756_p9 = pneg %p1057_p8  ;;  %s191_s6 = sshll.u32 %s979_s30, 4  ;;  %s1072_s6 = int_to_ptr.vmem [resolvable:$true] %s191_s6 }
  0x10   : > { %p821_p12 = scmp.ne.s32.totalorder %s1276_s1, %s820_s9  ;;  %p827_p5 = scmp.lt.u32.totalorder %s820_s9, %s1276_s1 }
  0x11   : > { %p1068_p11 = pnand %p756_p9, %p1281_p1 }
  0x13   : > { %p822_p13 = pneg %p1068_p11 }
  0x15   : > { %p823_p0 = pnand %p822_p13, %p821_p12 }
  0x17   : > { %p824_p3 = pneg %p823_p0 }
  0x19   : > { %p829_p7 = pnand %p827_p5, %p824_p3 }
  0x1b   : > { %832 = shalt.err (!%p829_p7)
}
  0x1c   : > { %s833_s14 = scalar_lea.vmem %s1061_s28, 2048  ;;  %p841_p2 = scmp.lt.s32.totalorder %s1061_s28, %s1061_s28 }
  0x1d   : > { %p834_p9 = scmp.ne.s32.totalorder %s1061_s28, %s833_s14  ;;  %p842_p12 = scmp.lt.s32.totalorder %s833_s14, %s833_s14 }
  0x1f   : > { %p836_p10 = pnand %p834_p9, %p822_p13  ;;  %p843_p0 = por %p842_p12, %p841_p2 }
  0x21   : > { %p837_p1 = pneg %p836_p10 }
  0x23   : > { %p844_p6 = pnand %p843_p0, %p837_p1 }
  0x25   : > { %847 = shalt.err (!%p844_p6)
}
  0x26   : > { %s980_s15 = smov 128   ;;  %s981_s16 = smov 8  }
  0x27   : > { %759 = dma.hbm_to_vmem [thread:$0]  (!%p1068_p11), %s1276_s1, 2048, %s1061_s28, [#allocation6], %s980_s15, %s980_s15, %s981_s16  }
  0x28   : > { %s848_s7 = scalar_lea.hbm %s1278_s3, 2048 }
  0x29   : > { %p849_p2 = scmp.ne.s32.totalorder %s1278_s3, %s848_s7  ;;  %p855_p10 = scmp.lt.u32.totalorder %s848_s7, %s1278_s3 }
  0x2b   : > { %p851_p1 = pnand %p849_p2, %p822_p13 }
  0x2d   : > { %p852_p6 = pneg %p851_p1 }
  0x2f   : > { %p857_p3 = pnand %p855_p10, %p852_p6 }
  0x31   : > { %860 = shalt.err (!%p857_p3)
}
  0x32   : > { %s861_s28 = scalar_lea.vmem %s1072_s6, 2048  ;;  %p869_p12 = scmp.lt.s32.totalorder %s1072_s6, %s1072_s6 }
  0x33   : > { %p862_p5 = scmp.ne.s32.totalorder %s1072_s6, %s861_s28  ;;  %p870_p0 = scmp.lt.s32.totalorder %s861_s28, %s861_s28 }
  0x35   : > { %p864_p7 = pnand %p862_p5, %p822_p13  ;;  %p871_p2 = por %p870_p0, %p869_p12 }
  0x37   : > { %p865_p9 = pneg %p864_p7 }
  0x39   : > { %p872_p1 = pnand %p871_p2, %p865_p9 }
  0x3b   : > { %875 = shalt.err (!%p872_p1)
}
  0x3c   : > { %762 = dma.hbm_to_vmem [thread:$0]  (!%p1068_p11), %s1278_s3, 2048, %s1072_s6, [#allocation6], %s980_s15, %s980_s15, %s981_s16  }
  0x3d   : > { %s1127_s14 = sadd.s32 1, %s976_s21   ;;  %s29_s29 = sadd.s32 1, %s972_s20 }
  0x3e   : > { %s26_s17 = ssub.s32 %s976_s21, %s1127_s14  ;;  %p36_p13 = scmp.ne.s32.totalorder %s972_s20, %s968_s19 }
  0x3f   : > { %p27_p6 = scmp.eq.s32.totalorder %s26_s17, 0  ;;  %p37_p10 = scmp.eq.s32.totalorder %s976_s21, 0 }
  0x40   : > { %p1288_p3 = scmp.eq.s32.totalorder %s1038_s22, 1  ;;  %p773_p7 = scmp.lt.s32.totalorder %s976_s21, 2 }
  0x41   : > { %s1143_s27 = scalar_select %p27_p6, %s972_s20, %s29_s29  }
  0x42   : > { %p1137_p5 = por %p1288_p3, %p36_p13  ;;  %p38_p9 = por %p37_p10, %p36_p13 }
  0x43   : > { %s208_s30 = sand.u32 1, %s972_s20   ;;  %s580_s6 = sshll.u32 %s976_s21, 7 }
  0x44   : > { %s1289_s23 = scalar_select %p1137_p5, 1, 0 }
  0x45   : > { %s579_s7 = sshll.u32 %s208_s30, 3  ;;  %s1150_s8 = scalar_lea.hbm %s1275_s0, %s580_s6 }
  0x46   : > { %s212_s9 = scalar_lea.vmem [#allocation2], %s579_s7  ;;  %p1154_p11 = pnand %p773_p7, %p38_p9 }
  0x47   : > { %s219_s10 = sshll.u32 %s212_s9, 4  ;;  %s209_s28 = scalar_lea.sflag [#allocation3], %s208_s30  ;;  %s1152_s10 = int_to_ptr.vmem [resolvable:$true] %s219_s10 }
  0x48   : > { %s876_s12 = scalar_lea.hbm %s1150_s8, 128  ;;  %p878_p0 = pneg %p1154_p11 }
  0x49   : > { %p877_p12 = scmp.ne.s32.totalorder %s1150_s8, %s876_s12  ;;  %s881_s17 = scalar_lea.hbm %s1275_s0, 256 }
  0x4a   : > { %p882_p13 = scmp.lt.u32.totalorder %s1150_s8, %s1275_s0  ;;  %p883_p6 = scmp.lt.u32.totalorder %s881_s17, %s876_s12 }
  0x4b   : > { %p879_p2 = pnand %p878_p0, %p877_p12  ;;  %p885_p3 = scmp.lt.u32.totalorder %s876_s12, %s1150_s8 }
  0x4c   : > { %p884_p10 = por %p883_p6, %p882_p13 }
  0x4d   : > { %p880_p1 = pneg %p879_p2 }
  0x4e   : > { %p886_p7 = por %p885_p3, %p884_p10 }
  0x50   : > { %p887_p9 = pnand %p886_p7, %p880_p1 }
  0x52   : > { %890 = shalt.err (!%p887_p9)
}
  0x53   : > { %s891_s30 = scalar_lea.vmem %s1152_s10, 128  ;;  %s982_s15 = smov [#allocation2]  }
  0x54   : > { %p892_p12 = scmp.ne.s32.totalorder %s1152_s10, %s891_s30  ;;  %s896_s16 = sshll.u32 %s982_s15, 4  ;;  %s897_s16 = int_to_ptr.vmem [resolvable:$false] %s896_s16 }
  0x55   : > { %s898_s9 = scalar_lea.vmem %s897_s16, 256  ;;  %p899_p4 = scmp.lt.s32.totalorder %s1152_s10, %s897_s16 }
  0x56   : > { %p894_p2 = pnand %p892_p12, %p878_p0  ;;  %p900_p13 = scmp.lt.s32.totalorder %s898_s9, %s891_s30 }
  0x58   : > { %p895_p5 = pneg %p894_p2  ;;  %p901_p6 = por %p900_p13, %p899_p4 }
  0x5a   : > { %p902_p10 = pnand %p901_p6, %p895_p5 }
  0x5c   : > { %905 = shalt.err (!%p902_p10)
}
  0x5d   : > { %766 = dma.hbm_to_vmem [thread:$0]  (!%p1154_p11), %s1150_s8, 128, %s1152_s10, %s209_s28  }
  0x5e   : > { %228 = sbr.rel (%p1057_p8) target bundleno = 613 (0x265), region = 40  ;;  %s1186_s12 = sand.u32 (!%p1057_p8), 1, %s968_s19  }
  0x5f   : > { %s582_s13 = sshll.u32 (!%p1057_p8), %s1186_s12, 3  ;;  %s231_s29 = scalar_lea.sflag (!%p1057_p8), [#allocation3], %s1186_s12 }
  0x60   : > { %s1192_s17 = scalar_lea.vmem (!%p1057_p8), [#allocation2], %s582_s13  ;;  %p1291_p4 = scmp.ne.s32.totalorder (!%p1057_p8), %s1284_s24, 0 }
  0x65   : > { %951 = dma.done.wait (%p1291_p4), %s231_s29, 128  }
  0x66   : > { %953 = vsyncadd (%p1291_p4), %s231_s29, 4294967168  ;;  %p1292_p5 = scmp.eq.s32.totalorder %s1038_s22, 0 }
  0x68   : > { %955 = dma.done.wait (%p1292_p5), [#allocation6], 4096   ;;  %p1293_p8 = pmov %p1292_p5 }
  0x69   : > { %v983_v0 = vmov 0.0|0.0   ;;  %vm984_vm0 = vmmov 0   ;;  %v985_v1 = vmov 0.0   ;;  %v270_v2 = vld [vmem:[#allocation5] sm:$0xff]  ;;  %v271_v3 = vld [vmem:[#allocation5 + $0x8] sm:$0xff]  ;;  %v272_v4 = vld [vmem:[#allocation5 + $0x10] sm:$0xff] }
  0x6a   : > { %957 = vsyncadd (%p1293_p8), [#allocation6], 4294963200  ;;  %696 = vmatprep.subr.bf16.mxu0 %v983_v0  ;;  %658 = vmatprep.mubr.msk.f32.mxu0 %vm984_vm0, %v985_v1  ;;  %v697_v5 = vpack.c.bf16 %v271_v3, %v270_v2  ;;  %v273_v6 = vld [vmem:[#allocation5 + $0x18] sm:$0xff]  ;;  %v274_v8 = vld [vmem:[#allocation5 + $0x20] sm:$0xff]  ;;  %s589_s11 = sshll.u32 %s1038_s22, 7  ;;  %s268_s28 = scalar_lea.vmem [#allocation8], %s582_s13 }
  0x6b   : > { %720 = vmatprep.subr.bf16.mxu1 %v983_v0  ;;  %693 = vmatprep.mubr.msk.f32.mxu1 %vm984_vm0, %v985_v1  ;;  %v700_v7 = vpack.c.bf16 %v273_v6, %v272_v4  ;;  %v275_v9 = vld [vmem:[#allocation5 + $0x28] sm:$0xff]  ;;  %v276_v11 = vld [vmem:[#allocation5 + $0x30] sm:$0xff]  ;;  %v277_v12 = vld [vmem:[#allocation5 + $0x38] sm:$0xff]  ;;  %s485_s7 = sshll.u32 %s268_s28, 4  ;;  %s1231_s15 = scalar_lea.hbm %s1280_s5, %s589_s11  ;;  %s1233_s7 = int_to_ptr.vmem [resolvable:$true] %s485_s7 }
  0x6c   : > { %698 = vmatpush3.bf16.msra.mxu0 %v697_v5  ;;  %v703_v10 = vpack.c.bf16 %v275_v9, %v274_v8  ;;  %v706_v13 = vpack.c.bf16 %v277_v12, %v276_v11  ;;  %v278_v14 = vld [vmem:[#allocation5 + $0x40] sm:$0xff]  ;;  %v279_v15 = vld [vmem:[#allocation5 + $0x48] sm:$0xff]  ;;  %v280_v17 = vld [vmem:[#allocation5 + $0x50] sm:$0xff]  ;;  %s472_s16 = scalar_lea.sflag [#allocation4], %s1186_s12  ;;  %s906_s9 = scalar_lea.vmem %s1233_s7, 128 }
  0x6d   : > { %699 = vmatprep.subr.bf16.mxu0 %v983_v0  ;;  %v709_v16 = vpack.c.bf16 %v279_v15, %v278_v14  ;;  %v281_v18 = vld [vmem:[#allocation5 + $0x58] sm:$0xff]  ;;  %v282_v20 = vld [vmem:[#allocation5 + $0x60] sm:$0xff]  ;;  %v283_v21 = vld [vmem:[#allocation5 + $0x68] sm:$0xff]  ;;  %p907_p11 = scmp.ne.s32.totalorder %s1233_s7, %s906_s9  ;;  %p1294_p0 = scmp.ne.s32.totalorder %s1289_s23, 0 }
  0x6e   : > { %v712_v19 = vpack.c.bf16 %v281_v18, %v280_v17  ;;  %v715_v22 = vpack.c.bf16 %v283_v21, %v282_v20  ;;  %v284_v23 = vld [vmem:[#allocation5 + $0x70] sm:$0xff]  ;;  %v285_v24 = vld [vmem:[#allocation5 + $0x78] sm:$0xff]  ;;  %v377_v27 = vld [vmem:[#allocation7] sm:$0xff]  ;;  %s986_s22 = smov [#allocation8]  }
  0x6f   : > { %v718_v25 = vpack.c.bf16 %v285_v24, %v284_v23  ;;  %v269_v26 = vld [vmem:[%s1192_s17] sm:$0xff]  ;;  %v378_v28 = vld [vmem:[#allocation7 + $0x8] sm:$0xff]  ;;  %v381_v33 = vld [vmem:[#allocation7 + $0x20] sm:$0xff]  ;;  %p908_p1 = pnand %p907_p11, %p1294_p0  ;;  %s910_s13 = sshll.u32 %s986_s22, 4  ;;  %s911_s13 = int_to_ptr.vmem [resolvable:$false] %s910_s13 }
  0x70   : > { %701 = vmatpush3.bf16.msra.mxu0 %v700_v7  ;;  %v721_v29 = vpack.c.bf16 %v378_v28, %v377_v27  ;;  %v379_v30 = vld [vmem:[#allocation7 + $0x10] sm:$0xff]  ;;  %v380_v31 = vld [vmem:[#allocation7 + $0x18] sm:$0xff]  ;;  %v382_v34 = vld [vmem:[#allocation7 + $0x28] sm:$0xff]  ;;  %s912_s29 = scalar_lea.vmem %s911_s13, 256  ;;  %p913_p7 = scmp.lt.s32.totalorder %s1233_s7, %s911_s13 }
  0x71   : > { %702 = vmatprep.subr.bf16.mxu0 %v983_v0  ;;  %v724_v32 = vpack.c.bf16 %v380_v31, %v379_v30  ;;  %v727_v35 = vpack.c.bf16 %v382_v34, %v381_v33  ;;  %v383_v36 = vld [vmem:[#allocation7 + $0x30] sm:$0xff]  ;;  %v384_v37 = vld [vmem:[#allocation7 + $0x38] sm:$0xff]  ;;  %v385_v39 = vld [vmem:[#allocation7 + $0x40] sm:$0xff]  ;;  %p909_p3 = pneg %p908_p1  ;;  %p914_p9 = scmp.lt.s32.totalorder %s912_s29, %s906_s9 }
  0x72   : > { %722 = vmatpush3.bf16.msra.mxu1 %v721_v29  ;;  %v730_v38 = vpack.c.bf16 %v384_v37, %v383_v36  ;;  %v386_v40 = vld [vmem:[#allocation7 + $0x48] sm:$0xff]  ;;  %v387_v42 = vld [vmem:[#allocation7 + $0x50] sm:$0xff]  ;;  %v388_v43 = vld [vmem:[#allocation7 + $0x58] sm:$0xff] }
  0x73   : > { %723 = vmatprep.subr.bf16.mxu1 %v983_v0  ;;  %v733_v41 = vpack.c.bf16 %v386_v40, %v385_v39  ;;  %v736_v44 = vpack.c.bf16 %v388_v43, %v387_v42  ;;  %v389_v45 = vld [vmem:[#allocation7 + $0x60] sm:$0xff]  ;;  %v390_v46 = vld [vmem:[#allocation7 + $0x68] sm:$0xff]  ;;  %v391_v48 = vld [vmem:[#allocation7 + $0x70] sm:$0xff]  ;;  %p915_p12 = por %p914_p9, %p913_p7 }
  0x74   : > { %704 = vmatpush3.bf16.msra.mxu0 %v703_v10  ;;  %v739_v47 = vpack.c.bf16 %v390_v46, %v389_v45  ;;  %v392_v49 = vld [vmem:[#allocation7 + $0x78] sm:$0xff]  ;;  %v586_v51 = vld [vmem:[%s1277_s2] ss:$0 sm:$0xff] }
  0x75   : > { %705 = vmatprep.subr.bf16.mxu0 %v983_v0  ;;  %v742_v50 = vpack.c.bf16 %v392_v49, %v391_v48  ;;  %v587_v3 = vld [vmem:[%s1279_s4] ss:$0 sm:$0xff]  ;;  %p916_p2 = pnand %p915_p12, %p909_p3 }
  0x76   : > { %725 = vmatpush3.bf16.msra.mxu1 %v724_v32 }
  0x77   : > { %726 = vmatprep.subr.bf16.mxu1 %v983_v0 }
  0x78   : > { %707 = vmatpush3.bf16.msra.mxu0 %v706_v13 }
  0x79   : > { %708 = vmatprep.subr.bf16.mxu0 %v983_v0 }
  0x7a   : > { %728 = vmatpush3.bf16.msra.mxu1 %v727_v35 }
  0x7b   : > { %729 = vmatprep.subr.bf16.mxu1 %v983_v0 }
  0x7c   : > { %710 = vmatpush3.bf16.msra.mxu0 %v709_v16 }
  0x7d   : > { %711 = vmatprep.subr.bf16.mxu0 %v983_v0 }
  0x7e   : > { %731 = vmatpush3.bf16.msra.mxu1 %v730_v38 }
  0x7f   : > { %732 = vmatprep.subr.bf16.mxu1 %v983_v0 }
  0x80   : > { %713 = vmatpush3.bf16.msra.mxu0 %v712_v19 }
  0x81   : > { %714 = vmatprep.subr.bf16.mxu0 %v983_v0 }
  0x82   : > { %734 = vmatpush3.bf16.msra.mxu1 %v733_v41 }
  0x83   : > { %735 = vmatprep.subr.bf16.mxu1 %v983_v0 }
  0x84   : > { %716 = vmatpush3.bf16.msra.mxu0 %v715_v22 }
  0x85   : > { %717 = vmatprep.subr.bf16.mxu0 %v983_v0 }
  0x86   : > { %737 = vmatpush3.bf16.msra.mxu1 %v736_v44 }
  0x87   : > { %738 = vmatprep.subr.bf16.mxu1 %v983_v0 }
  0x88   : > { %719 = vmatpush3.bf16.msra.mxu0 %v718_v25 }
  0x8a   : > { %740 = vmatpush3.bf16.msra.mxu1 %v739_v47 }
  0x8b   : > { %659 = vmatmul.mubr.f32.vlgmr.msra.gmra.mrb[0].mxu0 %v269_v26  ;;  %741 = vmatprep.subr.bf16.mxu1 %v983_v0 }
  0x8e   : > { %743 = vmatpush3.bf16.msra.mxu1 %v742_v50 }
 0x15e   : > { %v359_v52 = vpop.f32.mrb[0].mxu0 }
 0x15f   : > { %v360_v53 = vadd.f32 %v586_v51, %v359_v52  ;;  %v660_v54 = vpop.f32.mrb[1].mxu0 }
 0x161   : > { %v364_v55 = vmin.f32 %v360_v53, 20.0  ;;  %vm363_vm2 = vcmp.gt.f32.partialorder %v360_v53, 20.0 }
 0x163   : > { %v365_v56 = vmul.f32 1.442695, %v364_v55 }
 0x165   : > { %816 = vpow2.f32 %v365_v56 }
 0x16f   : > { %v817_v57 = vpop.eup %816 }
 0x170   : > { %v367_v58 = vadd.f32 1.0, %v817_v57  ;;  %v370_v59 = vmul.f32 -0.5, %v817_v57  ;;  %v373_v61 = vand.u32 2147483647, %v817_v57 }
 0x172   : > { %818 = vlog2.f32 %v367_v58  ;;  %v371_v60 = vadd.f32 1.0, %v370_v59  ;;  %vm374_vm1 = vcmp.lt.f32.partialorder %v373_v61, 0.0004427343 }
 0x174   : > { %v372_v0 = vmul.f32 %v817_v57, %v371_v60 }
 0x17c   : > { %v819_v62 = vpop.eup %818 }
 0x17d   : > { %v369_v63 = vmul.f32 0.6931472, %v819_v62 }
 0x17f   : > { %v375_v1 = vsel %vm374_vm1, %v372_v0, %v369_v63 }
 0x180   : > { %v376_v2 = vsel %vm363_vm2, %v360_v53, %v375_v1 }
 0x181   : > { %694 = vmatmul.mubr.f32.vlgmr.msra.gmra.mrb[0].mxu1 %v376_v2 }
 0x254   : > { %v466_v4 = vpop.f32.mrb[0].mxu1 }
 0x255   : > { %v467_v5 = vadd.f32 %v587_v3, %v466_v4  ;;  %v695_v6 = vpop.f32.mrb[1].mxu1 }
 0x257   : > { %470 = vst [vmem:[%s268_s28] sm:$0xff] %v467_v5 }
 0x258   : > { %919 = shalt.err (!%p916_p2)
}
 0x259   : > { %s920_s12 = scalar_lea.hbm %s1231_s15, 128  ;;  %s924_s26 = scalar_lea.hbm %s1280_s5, 256 }
 0x25a   : > { %p921_p13 = scmp.ne.s32.totalorder %s1231_s15, %s920_s12  ;;  %p925_p4 = scmp.lt.u32.totalorder %s1231_s15, %s1280_s5 }
 0x25b   : > { %p926_p5 = scmp.lt.u32.totalorder %s924_s26, %s920_s12  ;;  %p928_p11 = scmp.lt.u32.totalorder %s920_s12, %s1231_s15 }
 0x25c   : > { %p922_p6 = pnand %p921_p13, %p1294_p0 }
 0x25d   : > { %p927_p8 = por %p926_p5, %p925_p4 }
 0x25e   : > { %p923_p10 = pneg %p922_p6 }
 0x25f   : > { %p929_p1 = por %p928_p11, %p927_p8 }
 0x261   : > { %p930_p3 = pnand %p929_p1, %p923_p10 }
 0x263   : > { %933 = shalt.err (!%p930_p3)
}
 0x264   : > { %754 = dma.vmem_to_hbm [thread:$0]  (%p1294_p0), %s1233_s7, 128, %s1231_s15, %s472_s16  }
 0x265 PF: > { %s497_s11 = sand.u32 1, %s964_s18   ;;  %p1295_p7 = scmp.ne.s32.totalorder %s1285_s25, 0 }
 0x266   : > { %p1296_p9 = scmp.ge.s32.totalorder %s976_s21, 2  ;;  %s498_s28 = scalar_lea.sflag [#allocation4], %s497_s11 }
 0x268   : > { %p768_p12 = pnand %p1296_p9, %p1295_p7 }
 0x26a   : > { %959 = dma.done.wait (!%p768_p12), %s498_s28, 128  }
 0x26b   : > { %961 = vsyncadd (!%p768_p12), %s498_s28, 4294967168  ;;  %p19_p2 = scmp.ge.s32.totalorder %s1127_s14, 4   ;;  %s1297_s18 = smov %s968_s19 }
 0x26c   : > { %s1298_s19 = smov %s972_s20  ;;  %s1299_s20 = smov %s1143_s27 }
 0x26d   : > { %s1300_s21 = smov %s1127_s14  ;;  %21 = sbr.rel (!%p19_p2) target bundleno = 6 (0x6), region = 93 }
 0x274   :  { %503 = vsyncpa [#allocation3], 1 }
 0x275   :  { %505 = vsyncpa [#allocation3 + $0x1], 1 }
 0x276   :  { %506 = vsyncpa [#allocation6], 1 }
 0x277   :  { %507 = vsyncpa [#allocation4], 1 }
 0x278   :  { %509 = vsyncpa [#allocation4 + $0x1], 1 }

</bundles_post_ra>
